<compile_context>
chip_gen: v7x
topology: tpu7x:2x2x1
jax: 0.10.0
libtpu: 0.0.40
codegen_flags: <defaults>
</compile_context>

<pallas_src>
import functools

import jax
import jax.numpy as jnp
from jax import lax
from jax.experimental import pallas as pl
from jax.experimental.pallas import tpu as pltpu

INPUT_DIM = 2
HIDDEN_DIM = 64
OUTPUT_DIM = 2


# ----------------------------------------------------------------------------
# Per-generation knobs
# ----------------------------------------------------------------------------
def _device_kind():
    try:
        return jax.devices()[0].device_kind.lower()
    except Exception:  # pragma: no cover - defensive
        return ""


_KIND = _device_kind()
# bf16 VPU/EUP only exists on v6e / v7x; older chips keep the f32 tanh path.
_BF16_ELEMENTWISE = ("v6" in _KIND) or ("v7" in _KIND)
_COMPUTE_DTYPE = jnp.bfloat16 if _BF16_ELEMENTWISE else jnp.float32
# v5e (and older): single vector-store slot -> cap the tile lower so the
# (64, T) hidden temporaries spill less aggressively.
_MAX_TILE = 2048 if _BF16_ELEMENTWISE else 1024


def _choose_tile(n):
    """Pick the lane tile: multiple of 128, <= _MAX_TILE, and sized so the
    'parallel' grid has at least 2 steps when the batch allows it (v7x has two
    TensorCores)."""
    n = max(int(n), 1)
    target = 128 * int(pl.cdiv(pl.cdiv(n, 2), 128))
    tile = int(min(_MAX_TILE, max(128, target)))
    n_pad = int(tile * pl.cdiv(n, tile))
    return tile, n_pad


# ----------------------------------------------------------------------------
# Shared RHS math (runs inside the kernels)
# ----------------------------------------------------------------------------
def _ode_rhs(theta, omega, w1c0, w1c1, b1, w2, b2, w3, b3, w4, b4, c, k, cdt):
    """dy/dt for one tile, state carried as two (1, T) f32 rows.

    w1c0/w1c1/b1/b4 are f32 ((64,1)/(2,1) or pre-broadcast to (*, T));
    w2/w3/w4 are bf16 (MXU inputs); b2/b3 are in the compute dtype `cdt`."""
    # Layer 1 (in=2): two VPU broadcast-FMAs instead of a K=2 matmul.
    pre = w1c0 * theta + w1c1 * omega + b1                           # (64,T) f32
    h = jnp.tanh(pre.astype(cdt))
    # Layers 2/3 (64x64) on the MXU: bf16 inputs; bias add + tanh in `cdt`
    # (bf16 on v6e/v7x -> ~2x EUP throughput, f32 on v5e).
    h = jnp.tanh(jnp.dot(w2, h.astype(jnp.bfloat16),
                         preferred_element_type=cdt) + b2)
    h = jnp.tanh(jnp.dot(w3, h.astype(jnp.bfloat16),
                         preferred_element_type=cdt) + b3)
    fa = jnp.dot(w4, h.astype(jnp.bfloat16),
                 preferred_element_type=jnp.float32) + b4            # (2,T) f32

    # Physics prior (kept in f32).
    # TODO(synk): compute_fp is not defined in the reference source; the
    # standard damped-pendulum prior dtheta/dt = omega,
    # domega/dt = -c*omega - k*sin(theta) is assumed here.
    dtheta = omega + fa[0:1, :]
    domega = (-c) * omega - k * jnp.sin(theta) + fa[1:2, :]
    return dtheta, domega


# ----------------------------------------------------------------------------
# Kernels
# ----------------------------------------------------------------------------
def _odefunc_kernel(y_ref, w1_ref, b1_ref, w2_ref, b2_ref, w3_ref, b3_ref,
                    w4_ref, b4_ref, out_ref, *, c, k, cdt):
    w1 = w1_ref[...]
    theta = y_ref[0:1, :]
    omega = y_ref[1:2, :]
    dtheta, domega = _ode_rhs(theta, omega, w1[:, 0:1], w1[:, 1:2],
                              b1_ref[...], w2_ref[...], b2_ref[...],
                              w3_ref[...], b3_ref[...], w4_ref[...],
                              b4_ref[...], c, k, cdt)
    out_ref[0:1, :] = dtheta
    out_ref[1:2, :] = domega


def _rk4_kernel(y_ref, w1_ref, b1_ref, w2_ref, b2_ref, w3_ref, b3_ref,
                w4_ref, b4_ref, out_ref, *, c, k, dt, num_steps, cdt):
    tile = y_ref.shape[-1]
    # Hoist loop-invariant weight loads and lane-broadcasts out of the time
    # loop (JAX does not CSE broadcast_in_dim; without this every one of the
    # 4*num_steps rhs evals re-emits them).
    w1 = w1_ref[...]
    w1c0 = jnp.broadcast_to(w1[:, 0:1], (HIDDEN_DIM, tile))
    w1c1 = jnp.broadcast_to(w1[:, 1:2], (HIDDEN_DIM, tile))
    b1 = jnp.broadcast_to(b1_ref[...], (HIDDEN_DIM, tile))
    w2 = w2_ref[...]
    b2 = jnp.broadcast_to(b2_ref[...], (HIDDEN_DIM, tile))
    w3 = w3_ref[...]
    b3 = jnp.broadcast_to(b3_ref[...], (HIDDEN_DIM, tile))
    w4 = w4_ref[...]
    b4 = jnp.broadcast_to(b4_ref[...], (OUTPUT_DIM, tile))

    def rhs(th, om):
        return _ode_rhs(th, om, w1c0, w1c1, b1, w2, b2, w3, b3, w4, b4,
                        c, k, cdt)

    half = 0.5 * dt
    sixth = dt / 6.0

    def step(_, carry):
        th, om = carry
        k1t, k1o = rhs(th, om)
        k2t, k2o = rhs(th + half * k1t, om + half * k1o)
        k3t, k3o = rhs(th + half * k2t, om + half * k2o)
        k4t, k4o = rhs(th + dt * k3t, om + dt * k3o)
        th = th + sixth * (k1t + 2.0 * k2t + 2.0 * k3t + k4t)
        om = om + sixth * (k1o + 2.0 * k2o + 2.0 * k3o + k4o)
        return th, om

    theta0 = y_ref[0:1, :]
    omega0 = y_ref[1:2, :]
    theta_t, omega_t = lax.fori_loop(0, num_steps, step, (theta0, omega0),
                                     unroll=2)
    out_ref[0:1, :] = theta_t
    out_ref[1:2, :] = omega_t


# ----------------------------------------------------------------------------
# Wrappers
# ----------------------------------------------------------------------------
def _weight_specs():
    zero = lambda i: (0, 0)  # block (0,0) every grid step -> VMEM-resident
    return [
        pl.BlockSpec((HIDDEN_DIM, INPUT_DIM), zero),    # w1
        pl.BlockSpec((HIDDEN_DIM, 1), zero),            # b1
        pl.BlockSpec((HIDDEN_DIM, HIDDEN_DIM), zero),   # w2
        pl.BlockSpec((HIDDEN_DIM, 1), zero),            # b2
        pl.BlockSpec((HIDDEN_DIM, HIDDEN_DIM), zero),   # w3
        pl.BlockSpec((HIDDEN_DIM, 1), zero),            # b3
        pl.BlockSpec((OUTPUT_DIM, HIDDEN_DIM), zero),   # w4
        pl.BlockSpec((OUTPUT_DIM, 1), zero),            # b4
    ]


def _prep_kernel_params(params):
    """Host-side dtype prep: MXU weights -> bf16, hidden biases -> compute
    dtype.  Removes per-grid-step casts and halves the weight DMA bytes."""
    w1, b1, w2, b2, w3, b3, w4, b4 = params
    cdt = _COMPUTE_DTYPE
    return (w1.astype(jnp.float32), b1.astype(jnp.float32),
            w2.astype(jnp.bfloat16), b2.astype(cdt),
            w3.astype(jnp.bfloat16), b3.astype(cdt),
            w4.astype(jnp.bfloat16), b4.astype(jnp.float32))


def _pad_batch(y, tile):
    """(N, 2) -> (2, N_pad) with batch on the lane axis, zero-padded."""
    n = y.shape[0]
    n_pad = int(tile * pl.cdiv(n, tile))
    yt = jnp.zeros((INPUT_DIM, n_pad), jnp.float32).at[:, :n].set(
        y.astype(jnp.float32).T)
    return yt, n


_WEIGHT_ELEMS = (HIDDEN_DIM * INPUT_DIM + HIDDEN_DIM
                 + 2 * (HIDDEN_DIM * HIDDEN_DIM + HIDDEN_DIM)
                 + OUTPUT_DIM * HIDDEN_DIM + OUTPUT_DIM)


def _cost(n_rows, n_evals=1):
    flops_per_row = 2 * (INPUT_DIM * HIDDEN_DIM
                         + 2 * HIDDEN_DIM * HIDDEN_DIM
                         + HIDDEN_DIM * OUTPUT_DIM)
    return pl.CostEstimate(
        flops=int(n_evals * n_rows * flops_per_row),
        transcendentals=int(n_evals * n_rows * (3 * HIDDEN_DIM + 1)),
        bytes_accessed=int(4 * (2 * INPUT_DIM * n_rows + _WEIGHT_ELEMS)),
    )


def odefunc_forward(t, y, params, c=0.0, k=1.0):
    """One RHS evaluation: dy/dt = fp(y) + net(y).  `t` ignored (autonomous)."""
    del t
    tile, n_pad = _choose_tile(y.shape[0])
    yt, n = _pad_batch(y, tile)
    kparams = _prep_kernel_params(params)
    out = pl.pallas_call(
        functools.partial(_odefunc_kernel, c=float(c), k=float(k),
                          cdt=_COMPUTE_DTYPE),
        out_shape=jax.ShapeDtypeStruct((OUTPUT_DIM, n_pad), jnp.float32),
        grid=(n_pad // tile,),
        in_specs=[pl.BlockSpec((INPUT_DIM, tile), lambda i: (0, i))]
                 + _weight_specs(),
        out_specs=pl.BlockSpec((OUTPUT_DIM, tile), lambda i: (0, i)),
        compiler_params=pltpu.CompilerParams(
            dimension_semantics=("parallel",)),
        cost_estimate=_cost(n_pad),
    )(yt, *kparams)
    return out[:, :n].T


def odefunc_integrate_rk4(y0, params, dt, num_steps, c=0.0, k=1.0):
    """Fused RK4 integrator: the whole time loop runs in ONE pallas_call with
    weights resident in VMEM (amortizes launch + weight DMA over all steps)."""
    tile, n_pad = _choose_tile(y0.shape[0])
    yt, n = _pad_batch(y0, tile)
    kparams = _prep_kernel_params(params)
    out = pl.pallas_call(
        functools.partial(_rk4_kernel, c=float(c), k=float(k),
                          dt=float(dt), num_steps=int(num_steps),
                          cdt=_COMPUTE_DTYPE),
        out_shape=jax.ShapeDtypeStruct((INPUT_DIM, n_pad), jnp.float32),
        grid=(n_pad // tile,),
        in_specs=[pl.BlockSpec((INPUT_DIM, tile), lambda i: (0, i))]
                 + _weight_specs(),
        out_specs=pl.BlockSpec((INPUT_DIM, tile), lambda i: (0, i)),
        compiler_params=pltpu.CompilerParams(
            dimension_semantics=("parallel",)),
        cost_estimate=_cost(n_pad, n_evals=4 * int(num_steps)),
    )(yt, *kparams)
    return out[:, :n].T


# ----------------------------------------------------------------------------
# Params (PyTorch [out, in] layout) + pure-JAX references
# ----------------------------------------------------------------------------
def init_params(key):
    """weights ~ N(0, 0.001), bias = 0; weights kept in PyTorch [out, in]."""
    shapes = [(HIDDEN_DIM, INPUT_DIM), (HIDDEN_DIM, HIDDEN_DIM),
              (HIDDEN_DIM, HIDDEN_DIM), (OUTPUT_DIM, HIDDEN_DIM)]
    params = []
    for shape in shapes:
        key, sub = jax.random.split(key)
        w = 0.001 * jax.random.normal(sub, shape, dtype=jnp.float32)
        b = jnp.zeros((shape[0], 1), dtype=jnp.float32)
        params.extend([w, b])
    return tuple(params)


def odefunc_reference(t, y, params, c=0.0, k=1.0):
    del t
    w1, b1, w2, b2, w3, b3, w4, b4 = params
    h = jnp.tanh(y @ w1.T + b1.T)
    h = jnp.tanh(h @ w2.T + b2.T)
    h = jnp.tanh(h @ w3.T + b3.T)
    fa = h @ w4.T + b4.T
    theta, omega = y[:, 0:1], y[:, 1:2]
    fp = jnp.concatenate([omega, -c * omega - k * jnp.sin(theta)], axis=1)
    return fp + fa


def rk4_reference(y0, params, dt, num_steps, c=0.0, k=1.0):
    y = y0
    for _ in range(num_steps):
        k1 = odefunc_reference(None, y, params, c, k)
        k2 = odefunc_reference(None, y + 0.5 * dt * k1, params, c, k)
        k3 = odefunc_reference(None, y + 0.5 * dt * k2, params, c, k)
        k4 = odefunc_reference(None, y + dt * k3, params, c, k)
        y = y + (dt / 6.0) * (k1 + 2.0 * k2 + 2.0 * k3 + k4)
    return y


# ----------------------------------------------------------------------------
if __name__ == "__main__":
    key = jax.random.PRNGKey(0)
    k_params, k_y1, k_y2 = jax.random.split(key, 3)
    params = init_params(k_params)
    t = jnp.zeros((), dtype=jnp.float32)  # ignored (autonomous system)

    # Small forward pass (module-equivalent call).
    batch = 8
    y = jax.random.normal(k_y1, (batch, INPUT_DIM), dtype=jnp.float32)
    out = jax.block_until_ready(odefunc_forward(t, y, params))
    ref = jax.block_until_ready(odefunc_reference(t, y, params))
    assert out.shape == (batch, OUTPUT_DIM)
    assert jnp.allclose(out, ref, atol=1e-4, rtol=1e-3), \
        float(jnp.max(jnp.abs(out - ref)))

    # Larger batch exercises the tiled/parallel (2-step) grid and padding path.
    batch2 = 600
    y2 = jax.random.normal(k_y2, (batch2, INPUT_DIM), dtype=jnp.float32)
    out2 = jax.block_until_ready(odefunc_forward(t, y2, params))
    ref2 = jax.block_until_ready(odefunc_reference(t, y2, params))
    assert jnp.allclose(out2, ref2, atol=1e-4, rtol=1e-3), \
        float(jnp.max(jnp.abs(out2 - ref2)))

    # Fused RK4 integrator: single pallas_call for the whole time loop.
    dt, num_steps = 0.05, 16
    yT = jax.block_until_ready(odefunc_integrate_rk4(y, params, dt, num_steps))
    yT_ref = jax.block_until_ready(rk4_reference(y, params, dt, num_steps))
    assert yT.shape == (batch, INPUT_DIM)
    assert jnp.allclose(yT, yT_ref, atol=1e-4, rtol=1e-3), \
        float(jnp.max(jnp.abs(yT - yT_ref)))

    print("KERNEL_OK")
</pallas_src>

<mosaic_0001>
module attributes {stable_mosaic.version = 11 : i64} {
  func.func @_odefunc_kernel(%arg0: i32, %arg1: memref<2x128xf32, #tpu.memory_space<vmem>>, %arg2: memref<64x2xf32, #tpu.memory_space<vmem>>, %arg3: memref<64x1xf32, #tpu.memory_space<vmem>>, %arg4: memref<64x64xbf16, #tpu.memory_space<vmem>>, %arg5: memref<64x1xf32, #tpu.memory_space<vmem>>, %arg6: memref<64x64xbf16, #tpu.memory_space<vmem>>, %arg7: memref<64x1xf32, #tpu.memory_space<vmem>>, %arg8: memref<2x64xbf16, #tpu.memory_space<vmem>>, %arg9: memref<2x1xf32, #tpu.memory_space<vmem>>, %arg10: memref<2x128xf32, #tpu.memory_space<vmem>>) attributes {dimension_semantics = [#tpu.dimension_semantics<parallel>], iteration_bounds = array<i64: 1>, scalar_prefetch = 0 : i64, scratch_operands = 0 : i64, tpu.core_type = #tpu.core_type<tc>, window_params = [{transform_indices = @transform_0, window_bounds = array<i64: 2, 128>}, {pipeline_mode = #tpu.pipeline_mode<synchronous>, transform_indices = @transform_1, window_bounds = array<i64: 64, 2>}, {pipeline_mode = #tpu.pipeline_mode<synchronous>, transform_indices = @transform_2, window_bounds = array<i64: 64, 1>}, {pipeline_mode = #tpu.pipeline_mode<synchronous>, transform_indices = @transform_3, window_bounds = array<i64: 64, 64>}, {pipeline_mode = #tpu.pipeline_mode<synchronous>, transform_indices = @transform_4, window_bounds = array<i64: 64, 1>}, {pipeline_mode = #tpu.pipeline_mode<synchronous>, transform_indices = @transform_5, window_bounds = array<i64: 64, 64>}, {pipeline_mode = #tpu.pipeline_mode<synchronous>, transform_indices = @transform_6, window_bounds = array<i64: 64, 1>}, {pipeline_mode = #tpu.pipeline_mode<synchronous>, transform_indices = @transform_7, window_bounds = array<i64: 2, 64>}, {pipeline_mode = #tpu.pipeline_mode<synchronous>, transform_indices = @transform_8, window_bounds = array<i64: 2, 1>}, {transform_indices = @transform_9, window_bounds = array<i64: 2, 128>}]} {
    %c0 = arith.constant 0 : index
    %c0_0 = arith.constant 0 : index
    %0 = vector.load %arg2[%c0, %c0_0] : memref<64x2xf32, #tpu.memory_space<vmem>>, vector<64x2xf32>
    %c0_1 = arith.constant 0 : index
    %c0_2 = arith.constant 0 : index
    %1 = vector.load %arg1[%c0_1, %c0_2] : memref<2x128xf32, #tpu.memory_space<vmem>>, vector<1x128xf32>
    %c1 = arith.constant 1 : index
    %c0_3 = arith.constant 0 : index
    %2 = vector.load %arg1[%c1, %c0_3] : memref<2x128xf32, #tpu.memory_space<vmem>>, vector<1x128xf32>
    %3 = vector.extract_strided_slice %0 {offsets = [0, 0], sizes = [64, 1], strides = [1, 1]} : vector<64x2xf32> to vector<64x1xf32>
    %4 = vector.extract_strided_slice %0 {offsets = [0, 1], sizes = [64, 1], strides = [1, 1]} : vector<64x2xf32> to vector<64x1xf32>
    %c0_4 = arith.constant 0 : index
    %c0_5 = arith.constant 0 : index
    %5 = vector.load %arg3[%c0_4, %c0_5] : memref<64x1xf32, #tpu.memory_space<vmem>>, vector<64x1xf32>
    %c0_6 = arith.constant 0 : index
    %c0_7 = arith.constant 0 : index
    %6 = vector.load %arg4[%c0_6, %c0_7] : memref<64x64xbf16, #tpu.memory_space<vmem>>, vector<64x64xbf16>
    %c0_8 = arith.constant 0 : index
    %c0_9 = arith.constant 0 : index
    %7 = vector.load %arg5[%c0_8, %c0_9] : memref<64x1xf32, #tpu.memory_space<vmem>>, vector<64x1xf32>
    %c0_10 = arith.constant 0 : index
    %c0_11 = arith.constant 0 : index
    %8 = vector.load %arg6[%c0_10, %c0_11] : memref<64x64xbf16, #tpu.memory_space<vmem>>, vector<64x64xbf16>
    %c0_12 = arith.constant 0 : index
    %c0_13 = arith.constant 0 : index
    %9 = vector.load %arg7[%c0_12, %c0_13] : memref<64x1xf32, #tpu.memory_space<vmem>>, vector<64x1xf32>
    %c0_14 = arith.constant 0 : index
    %c0_15 = arith.constant 0 : index
    %10 = vector.load %arg8[%c0_14, %c0_15] : memref<2x64xbf16, #tpu.memory_space<vmem>>, vector<2x64xbf16>
    %c0_16 = arith.constant 0 : index
    %c0_17 = arith.constant 0 : index
    %11 = vector.load %arg9[%c0_16, %c0_17] : memref<2x1xf32, #tpu.memory_space<vmem>>, vector<2x1xf32>
    %12 = vector.broadcast %3 : vector<64x1xf32> to vector<64x128xf32>
    %13 = vector.broadcast %1 : vector<1x128xf32> to vector<64x128xf32>
    %14 = arith.mulf %12, %13 : vector<64x128xf32>
    %15 = vector.broadcast %4 : vector<64x1xf32> to vector<64x128xf32>
    %16 = vector.broadcast %2 : vector<1x128xf32> to vector<64x128xf32>
    %17 = arith.mulf %15, %16 : vector<64x128xf32>
    %18 = arith.addf %14, %17 : vector<64x128xf32>
    %19 = vector.broadcast %5 : vector<64x1xf32> to vector<64x128xf32>
    %20 = arith.addf %18, %19 : vector<64x128xf32>
    %21 = math.tanh %20 : vector<64x128xf32>
    %22 = arith.truncf %21 : vector<64x128xf32> to vector<64x128xbf16>
    %cst = arith.constant dense<0.000000e+00> : vector<64x128xf32>
    %23 = tpu.matmul %6, %22, %cst {dimension_numbers = #tpu.dot_dimension_numbers<[1], [0], [0], [1], [0, 0, 1, 1], [], []>} : vector<64x64xbf16>, vector<64x128xbf16>, vector<64x128xf32> -> vector<64x128xf32>
    %24 = vector.broadcast %7 : vector<64x1xf32> to vector<64x128xf32>
    %25 = arith.addf %23, %24 : vector<64x128xf32>
    %26 = math.tanh %25 : vector<64x128xf32>
    %27 = arith.truncf %26 : vector<64x128xf32> to vector<64x128xbf16>
    %cst_18 = arith.constant dense<0.000000e+00> : vector<64x128xf32>
    %28 = tpu.matmul %8, %27, %cst_18 {dimension_numbers = #tpu.dot_dimension_numbers<[1], [0], [0], [1], [0, 0, 1, 1], [], []>} : vector<64x64xbf16>, vector<64x128xbf16>, vector<64x128xf32> -> vector<64x128xf32>
    %29 = vector.broadcast %9 : vector<64x1xf32> to vector<64x128xf32>
    %30 = arith.addf %28, %29 : vector<64x128xf32>
    %31 = math.tanh %30 : vector<64x128xf32>
    %32 = arith.truncf %31 : vector<64x128xf32> to vector<64x128xbf16>
    %cst_19 = arith.constant dense<0.000000e+00> : vector<2x128xf32>
    %33 = tpu.matmul %10, %32, %cst_19 {dimension_numbers = #tpu.dot_dimension_numbers<[1], [0], [0], [1], [0, 0, 1, 1], [], []>} : vector<2x64xbf16>, vector<64x128xbf16>, vector<2x128xf32> -> vector<2x128xf32>
    %34 = vector.broadcast %11 : vector<2x1xf32> to vector<2x128xf32>
    %35 = arith.addf %33, %34 : vector<2x128xf32>
    %36 = vector.extract_strided_slice %35 {offsets = [0, 0], sizes = [1, 128], strides = [1, 1]} : vector<2x128xf32> to vector<1x128xf32>
    %37 = arith.addf %2, %36 : vector<1x128xf32>
    %cst_20 = arith.constant -0.000000e+00 : f32
    %38 = vector.broadcast %cst_20 : f32 to vector<1x128xf32>
    %39 = arith.mulf %38, %2 : vector<1x128xf32>
    %40 = math.sin %1 : vector<1x128xf32>
    %cst_21 = arith.constant 1.000000e+00 : f32
    %41 = vector.broadcast %cst_21 : f32 to vector<1x128xf32>
    %42 = arith.mulf %41, %40 : vector<1x128xf32>
    %43 = arith.subf %39, %42 : vector<1x128xf32>
    %44 = vector.extract_strided_slice %35 {offsets = [1, 0], sizes = [1, 128], strides = [1, 1]} : vector<2x128xf32> to vector<1x128xf32>
    %45 = arith.addf %43, %44 : vector<1x128xf32>
    %c0_22 = arith.constant 0 : index
    %c0_23 = arith.constant 0 : index
    %46 = vector.load %arg10[%c0_22, %c0_23] : memref<2x128xf32, #tpu.memory_space<vmem>>, vector<1x128xf32>
    tpu.vector_store %arg10[%c0_22, %c0_23], %37 {strides = array<i32>} : memref<2x128xf32, #tpu.memory_space<vmem>>, vector<1x128xf32>,
    %c1_24 = arith.constant 1 : index
    %c0_25 = arith.constant 0 : index
    %47 = vector.load %arg10[%c1_24, %c0_25] : memref<2x128xf32, #tpu.memory_space<vmem>>, vector<1x128xf32>
    tpu.vector_store %arg10[%c1_24, %c0_25], %45 {strides = array<i32>} : memref<2x128xf32, #tpu.memory_space<vmem>>, vector<1x128xf32>,
    return
  }
  func.func @transform_0(%arg0: i32) -> (i32, i32) {
    %c0_i32 = arith.constant 0 : i32
    %c0_i32_0 = arith.constant 0 : i32
    return %c0_i32, %arg0 : i32, i32
  }
  func.func @transform_1(%arg0: i32) -> (i32, i32) {
    %c0_i32 = arith.constant 0 : i32
    %c0_i32_0 = arith.constant 0 : i32
    %c0_i32_1 = arith.constant 0 : i32
    return %c0_i32, %c0_i32_0 : i32, i32
  }
  func.func @transform_2(%arg0: i32) -> (i32, i32) {
    %c0_i32 = arith.constant 0 : i32
    %c0_i32_0 = arith.constant 0 : i32
    %c0_i32_1 = arith.constant 0 : i32
    return %c0_i32, %c0_i32_0 : i32, i32
  }
  func.func @transform_3(%arg0: i32) -> (i32, i32) {
    %c0_i32 = arith.constant 0 : i32
    %c0_i32_0 = arith.constant 0 : i32
    %c0_i32_1 = arith.constant 0 : i32
    return %c0_i32, %c0_i32_0 : i32, i32
  }
  func.func @transform_4(%arg0: i32) -> (i32, i32) {
    %c0_i32 = arith.constant 0 : i32
    %c0_i32_0 = arith.constant 0 : i32
    %c0_i32_1 = arith.constant 0 : i32
    return %c0_i32, %c0_i32_0 : i32, i32
  }
  func.func @transform_5(%arg0: i32) -> (i32, i32) {
    %c0_i32 = arith.constant 0 : i32
    %c0_i32_0 = arith.constant 0 : i32
    %c0_i32_1 = arith.constant 0 : i32
    return %c0_i32, %c0_i32_0 : i32, i32
  }
  func.func @transform_6(%arg0: i32) -> (i32, i32) {
    %c0_i32 = arith.constant 0 : i32
    %c0_i32_0 = arith.constant 0 : i32
    %c0_i32_1 = arith.constant 0 : i32
    return %c0_i32, %c0_i32_0 : i32, i32
  }
  func.func @transform_7(%arg0: i32) -> (i32, i32) {
    %c0_i32 = arith.constant 0 : i32
    %c0_i32_0 = arith.constant 0 : i32
    %c0_i32_1 = arith.constant 0 : i32
    return %c0_i32, %c0_i32_0 : i32, i32
  }
  func.func @transform_8(%arg0: i32) -> (i32, i32) {
    %c0_i32 = arith.constant 0 : i32
    %c0_i32_0 = arith.constant 0 : i32
    %c0_i32_1 = arith.constant 0 : i32
    return %c0_i32, %c0_i32_0 : i32, i32
  }
  func.func @transform_9(%arg0: i32) -> (i32, i32) {
    %c0_i32 = arith.constant 0 : i32
    %c0_i32_0 = arith.constant 0 : i32
    return %c0_i32, %arg0 : i32, i32
  }
}

</mosaic_0001>

<bundles_post_ra>
// kernel: tpu_custom_call.1
= control target key start
LH: loop header
LB: loop body
LE: loop exit
PB: predicated region body
PF: predicated region fallthrough
CT: control target
= control target key end

     0   :  { %v919_v2 = vmov 1   ;;  %v920_v7 = vmov 0   ;;  %s1172_s0 = inlined_call_operand.vmem [shape: f32[2,128], index: 0, kind: input, shape index: {}]   ;;  %s1173_s1 = inlined_call_operand.vmem [shape: f32[64,2], index: 1, kind: input, shape index: {}]   ;;  %s1174_s2 = inlined_call_operand.vmem [shape: f32[64,1], index: 2, kind: input, shape index: {}]   ;;  %s1175_s3 = inlined_call_operand.vmem [shape: bf16[64,64], index: 3, kind: input, shape index: {}]   ;;  %s1176_s4 = inlined_call_operand.vmem [shape: f32[64,1], index: 4, kind: input, shape index: {}]   ;;  %s1177_s5 = inlined_call_operand.vmem [shape: bf16[64,64], index: 5, kind: input, shape index: {}]   ;;  %s1178_s6 = inlined_call_operand.vmem [shape: f32[64,1], index: 6, kind: input, shape index: {}]   ;;  %s1179_s7 = inlined_call_operand.vmem [shape: bf16[2,64], index: 7, kind: input, shape index: {}]   ;;  %s1180_s8 = inlined_call_operand.vmem [shape: f32[2,1], index: 8, kind: input, shape index: {}]   ;;  %s1181_s9 = inlined_call_operand.hbm [shape: f32[2,128], index: 9, kind: output, shape index: {}]  }
   0x1   :  { %v36_v0 = vld [vmem:[%s1173_s1 + $0x10] sm:$0xff]  ;;  %v34_v1 = vld [vmem:[%s1173_s1] sm:$0xff]  ;;  %827 = vset.pattern.permute.xlu0 %v919_v2  ;;  %825 = vset.pattern.permute.xlu1 %v919_v2  ;;  %v35_v4 = vld [vmem:[%s1173_s1 + $0x8] sm:$0xff] }
   0x2   :  { %147 = vperm.xlu0 %827, %v36_v0   ;;  %139 = vperm.xlu1 %825, %v34_v1   ;;  %v38_v3 = vld [vmem:[%s1173_s1 + $0x20] sm:$0xff]  ;;  %v40_v5 = vld [vmem:[%s1173_s1 + $0x30] sm:$0xff]  ;;  %v37_v6 = vld [vmem:[%s1173_s1 + $0x18] sm:$0xff] }
   0x6   :  { %155 = vperm.xlu0 %827, %v38_v3   ;;  %143 = vperm.xlu1 %825, %v35_v4  }
   0xa   :  { %163 = vperm.xlu0 %827, %v40_v5   ;;  %826 = vset.pattern.permute.xlu1 %v920_v7 }
   0xb   :  { %103 = vperm.xlu1 %826, %v37_v6  }
   0xe   :  { %832 = vset.pattern.permute.xlu0 %v920_v7 }
   0xf   :  { %88 = vperm.xlu0 %832, %v34_v1   ;;  %828 = vset.pattern.permute.xlu1 %v919_v2 }
  0x10   :  { %151 = vperm.xlu1 %828, %v37_v6  }
  0x11   :  { %14 = vsyncpa [#allocation3], 0  ;;  %v44_v8 = vld [vmem:[%s1174_s2] sm:$0xff]  ;;  %v45_v9 = vld [vmem:[%s1174_s2 + $0x8] sm:$0xff]  ;;  %vm310_vm0 = vcmask 523264   ;;  %v126_v38 = vlaneseq  ;;  %vm922_vm1 = vmmov 0  }
  0x12   :  { %v39_v10 = vld [vmem:[%s1173_s1 + $0x28] sm:$0xff]  ;;  %v47_v11 = vld [vmem:[%s1174_s2 + $0x18] sm:$0xff]  ;;  %v60_v13 = vld [vmem:[%s1176_s4] sm:$0xff] }
  0x13   :  { %93 = vperm.xlu0 %832, %v35_v4   ;;  %v49_v12 = vld [vmem:[%s1174_s2 + $0x28] sm:$0xff]  ;;  %v46_v14 = vld [vmem:[%s1174_s2 + $0x10] sm:$0xff]  ;;  %v64_v16 = vld [vmem:[%s1176_s4 + $0x20] sm:$0xff]  ;;  %v127_v41 = vshrl.u32 %v126_v38, 7 }
  0x14   :  { %829 = vset.pattern.permute.xlu1 %v920_v7  ;;  %v62_v15 = vld [vmem:[%s1176_s4 + $0x10] sm:$0xff]  ;;  %v41_v17 = vld [vmem:[%s1173_s1 + $0x38] sm:$0xff]  ;;  %v76_v19 = vld [vmem:[%s1178_s6] sm:$0xff] }
  0x15   :  { %192 = vperm.xlu1 %829, %v44_v8   ;;  %v66_v18 = vld [vmem:[%s1176_s4 + $0x30] sm:$0xff]  ;;  %v48_v20 = vld [vmem:[%s1174_s2 + $0x20] sm:$0xff]  ;;  %v51_v24 = vld [vmem:[%s1174_s2 + $0x38] sm:$0xff]  ;;  %v128_v44 = vsub.s32 0, %v127_v41 }
  0x16   :  { %v78_v21 = vld [vmem:[%s1178_s6 + $0x10] sm:$0xff]  ;;  %v80_v23 = vld [vmem:[%s1178_s6 + $0x20] sm:$0xff]  ;;  %v61_v26 = vld [vmem:[%s1176_s4 + $0x8] sm:$0xff] }
  0x17   :  { %98 = vperm.xlu0 %832, %v36_v0   ;;  %v50_v22 = vld [vmem:[%s1174_s2 + $0x30] sm:$0xff]  ;;  %v85_v27 = vld [vmem:[%s1180_s8] sm:$0x3]  ;;  %v63_v28 = vld [vmem:[%s1176_s4 + $0x18] sm:$0xff] }
  0x18   :  { %v82_v25 = vld [vmem:[%s1178_s6 + $0x30] sm:$0xff]  ;;  %v65_v29 = vld [vmem:[%s1176_s4 + $0x28] sm:$0xff]  ;;  %v67_v30 = vld [vmem:[%s1176_s4 + $0x38] sm:$0xff] }
  0x19   :  { %108 = vperm.xlu1 %829, %v38_v3   ;;  %v835_v31 = vld [vmem:[%s1175_s3] sm:$0xff]   ;;  %v77_v32 = vld [vmem:[%s1178_s6 + $0x8] sm:$0xff]  ;;  %v79_v33 = vld [vmem:[%s1178_s6 + $0x18] sm:$0xff] }
  0x1a   :  { %774 = vmatprep.mubr.msk.bf16.mxu0 %vm310_vm0, %v835_v31  ;;  %v81_v34 = vld [vmem:[%s1178_s6 + $0x28] sm:$0xff]  ;;  %v83_v35 = vld [vmem:[%s1178_s6 + $0x38] sm:$0xff]  ;;  %v1086_v45 = vld [vmem:[%s1172_s0 + $0x1] sm:$0x1] }
  0x1b   :  { %197 = vperm.xlu0 %832, %v45_v9   ;;  %v1091_v46 = vld [vmem:[%s1172_s0] sm:$0x1]  ;;  %v173_v49 = vrot.slane %v1086_v45, %v128_v44 }
  0x1c   :  { %v129_v50 = vrot.slane %v1091_v46, %v128_v44  ;;  %vm601_vm9 = vcmp.lt.s32.totalorder %v1091_v46, 0  ;;  %vm691_vm14 = vweird.f32 %v1091_v46 }
  0x1d   :  { %113 = vperm.xlu1 %829, %v39_v10  }
  0x1f   :  { %207 = vperm.xlu0 %832, %v47_v11  }
  0x21   :  { %830 = vset.pattern.permute.xlu1 %v919_v2 }
  0x22   :  { %159 = vperm.xlu1 %830, %v39_v10  }
  0x23   :  { %217 = vperm.xlu0 %832, %v49_v12  }
  0x26   :  { %831 = vset.pattern.permute.xlu1 %v920_v7 }
  0x27   :  { %252 = vperm.xlu0 %832, %v60_v13   ;;  %202 = vperm.xlu1 %831, %v46_v14  }
  0x2b   :  { %262 = vperm.xlu0 %832, %v62_v15   ;;  %118 = vperm.xlu1 %831, %v40_v5  }
  0x2f   :  { %272 = vperm.xlu0 %832, %v64_v16   ;;  %123 = vperm.xlu1 %831, %v41_v17  }
  0x33   :  { %282 = vperm.xlu0 %832, %v66_v18   ;;  %833 = vset.pattern.permute.xlu1 %v919_v2 }
  0x34   :  { %167 = vperm.xlu1 %833, %v41_v17  }
  0x37   :  { %402 = vperm.xlu0 %832, %v76_v19  }
  0x38   :  { %834 = vset.pattern.permute.xlu1 %v920_v7 }
  0x39   :  { %212 = vperm.xlu1 %834, %v48_v20  }
  0x3b   :  { %412 = vperm.xlu0 %832, %v78_v21  }
  0x3d   :  { %222 = vperm.xlu1 %834, %v50_v22  }
  0x3f   :  { %422 = vperm.xlu0 %832, %v80_v23  }
  0x41   :  { %227 = vperm.xlu1 %834, %v51_v24  }
  0x43   :  { %432 = vperm.xlu0 %832, %v82_v25  }
  0x45   :  { %257 = vperm.xlu1 %834, %v61_v26  }
  0x47   :  { %551 = vperm.xlu0 %832, %v85_v27  }
  0x49   :  { %267 = vperm.xlu1 %834, %v63_v28  }
  0x4d   :  { %277 = vperm.xlu1 %834, %v65_v29  }
  0x51   :  { %287 = vperm.xlu1 %834, %v67_v30  }
  0x55   :  { %407 = vperm.xlu1 %834, %v77_v32  }
  0x59   :  { %417 = vperm.xlu1 %834, %v79_v33  }
  0x5d   :  { %427 = vperm.xlu1 %834, %v81_v34  }
  0x61   :  { %437 = vperm.xlu1 %834, %v83_v35  }
  0x81   :  { %v140_v36 = vpop.permute.xlu1 %139  ;;  %v148_v37 = vpop.permute.xlu0 %147 }
  0x82   :  { %v174_v53 = vmul.f32 %v173_v49, %v140_v36  ;;  %v176_v3 = vmul.f32 %v173_v49, %v148_v37 }
  0x85   :  { %v144_v39 = vpop.permute.xlu1 %143  ;;  %v156_v40 = vpop.permute.xlu0 %155 }
  0x86   :  { %v175_v58 = vmul.f32 %v173_v49, %v144_v39  ;;  %v178_v22 = vmul.f32 %v173_v49, %v156_v40 }
  0x89   :  { %v164_v42 = vpop.permute.xlu0 %163 }
  0x8a   :  { %v104_v43 = vpop.permute.xlu1 %103  ;;  %v180_v32 = vmul.f32 %v173_v49, %v164_v42 }
  0x8b   :  { %v133_v2 = vmul.f32 %v129_v50, %v104_v43 }
  0x8e   :  { %v89_v47 = vpop.permute.xlu0 %88 }
  0x8f   :  { %v152_v48 = vpop.permute.xlu1 %151  ;;  %v130_v51 = vmul.f32 %v129_v50, %v89_v47 }
  0x90   :  { %v177_v1 = vmul.f32 %v173_v49, %v152_v48 }
  0x91   :  { %v182_v56 = vadd.f32 %v174_v53, %v130_v51  ;;  %v838_v51 = vld [vmem:[%s1175_s3 + $0x18] sm:$0xff]  }
  0x92   :  { %v94_v52 = vpop.permute.xlu0 %93  ;;  %v185_v7 = vadd.f32 %v177_v1, %v133_v2 }
  0x93   :  { %v131_v55 = vmul.f32 %v129_v50, %v94_v52  ;;  %v839_v52 = vld [vmem:[%s1177_s5] sm:$0xff]  }
  0x94   :  { %v193_v54 = vpop.permute.xlu1 %192  ;;  %790 = vmatprep.mubr.msk.bf16.mxu1 %vm310_vm0, %v839_v52 }
  0x95   :  { %v230_v59 = vadd.f32 %v193_v54, %v182_v56  ;;  %v183_v61 = vadd.f32 %v175_v58, %v131_v55 }
  0x96   :  { %v99_v57 = vpop.permute.xlu0 %98 }
  0x97   :  { %843 = vtanh.f32 %v230_v59  ;;  %v132_v4 = vmul.f32 %v129_v50, %v99_v57 }
  0x98   :  { %v109_v60 = vpop.permute.xlu1 %108 }
  0x99   :  { %v184_v9 = vadd.f32 %v176_v3, %v132_v4  ;;  %v134_v23 = vmul.f32 %v129_v50, %v109_v60 }
  0x9a   :  { %v198_v62 = vpop.permute.xlu0 %197 }
  0x9b   :  { %v231_v63 = vadd.f32 %v198_v62, %v183_v61  ;;  %v186_v28 = vadd.f32 %v178_v22, %v134_v23 }
  0x9c   :  { %v114_v0 = vpop.permute.xlu1 %113 }
  0x9d   :  { %845 = vtanh.f32 %v231_v63  ;;  %v135_v18 = vmul.f32 %v129_v50, %v114_v0 }
  0x9e   :  { %v208_v5 = vpop.permute.xlu0 %207 }
  0x9f   :  { %v233_v8 = vadd.f32 %v208_v5, %v185_v7 }
  0xa1   :  { %v160_v6 = vpop.permute.xlu1 %159  ;;  %v844_v10 = vpop.eup %843  ;;  %847 = vtanh.f32 %v233_v8 }
  0xa2   :  { %v179_v16 = vmul.f32 %v173_v49, %v160_v6  ;;  %v218_v26 = vpop.permute.xlu0 %217 }
  0xa4   :  { %v187_v20 = vadd.f32 %v179_v16, %v135_v18 }
  0xa6   :  { %v203_v11 = vpop.permute.xlu1 %202  ;;  %v235_v27 = vadd.f32 %v218_v26, %v187_v20  ;;  %v253_v53 = vpop.permute.xlu0 %252  ;;  %v841_v26 = vld [vmem:[%s1177_s5 + $0x10] sm:$0xff]  }
  0xa7   :  { %v846_v12 = vpop.eup %845  ;;  %v232_v13 = vadd.f32 %v203_v11, %v184_v9 }
  0xa8   :  { %v246_v14 = vpack.c.bf16 %v846_v12, %v844_v10 }
  0xa9   :  { %849 = vtanh.f32 %v232_v13 }
  0xaa   :  { %766 = vmatprep.subr.bf16.mxu0 %v246_v14  ;;  %v119_v15 = vpop.permute.xlu1 %118  ;;  %851 = vtanh.f32 %v235_v27  ;;  %v263_v55 = vpop.permute.xlu0 %262  ;;  %v842_v27 = vld [vmem:[%s1177_s5 + $0x18] sm:$0xff]  }
  0xab   :  { %767 = vmatpush3.bf16.msra.mxu0 %v246_v14  ;;  %v848_v19 = vpop.eup %847  ;;  %v136_v29 = vmul.f32 %v129_v50, %v119_v15 }
  0xad   :  { %v188_v34 = vadd.f32 %v180_v32, %v136_v29 }
  0xae   :  { %v124_v17 = vpop.permute.xlu1 %123  ;;  %v273_v60 = vpop.permute.xlu0 %272 }
  0xaf   :  { %v137_v36 = vmul.f32 %v129_v50, %v124_v17  ;;  %v837_v50 = vld [vmem:[%s1175_s3 + $0x10] sm:$0xff]  }
  0xb2   :  { %v283_v3 = vpop.permute.xlu0 %282 }
  0xb3   :  { %v850_v21 = vpop.eup %849  ;;  %v168_v24 = vpop.permute.xlu1 %167 }
  0xb4   :  { %v247_v25 = vpack.c.bf16 %v848_v19, %v850_v21  ;;  %v181_v33 = vmul.f32 %v173_v49, %v168_v24  ;;  %v852_v41 = vpop.eup %851  ;;  %v836_v49 = vld [vmem:[%s1175_s3 + $0x8] sm:$0xff]  }
  0xb6   :  { %768 = vmatprep.subr.bf16.mxu0 %v247_v25  ;;  %v189_v38 = vadd.f32 %v181_v33, %v137_v36  ;;  %v403_v29 = vpop.permute.xlu0 %402 }
  0xb7   :  { %769 = vmatpush3.bf16.msra.mxu0 %v247_v25  ;;  %v840_v25 = vld [vmem:[%s1177_s5 + $0x8] sm:$0xff]  }
  0xb8   :  { %v213_v30 = vpop.permute.xlu1 %212 }
  0xb9   :  { %v234_v31 = vadd.f32 %v213_v30, %v186_v28  ;;  %v921_v28 = vmov 0.0  }
  0xbb   :  { %853 = vtanh.f32 %v234_v31  ;;  %v413_v31 = vpop.permute.xlu0 %412 }
  0xbc   :  { %v223_v35 = vpop.permute.xlu1 %222 }
  0xbd   :  { %v236_v37 = vadd.f32 %v223_v35, %v188_v34 }
  0xbf   :  { %855 = vtanh.f32 %v236_v37  ;;  %v423_v36 = vpop.permute.xlu0 %422 }
  0xc0   :  { %v228_v39 = vpop.permute.xlu1 %227 }
  0xc1   :  { %v237_v40 = vadd.f32 %v228_v39, %v189_v38 }
  0xc3   :  { %857 = vtanh.f32 %v237_v40 }
  0xc4   :  { %v258_v54 = vpop.permute.xlu1 %257 }
  0xc5   :  { %v854_v43 = vpop.eup %853 }
  0xc6   :  { %v248_v44 = vpack.c.bf16 %v852_v41, %v854_v43 }
  0xc8   :  { %770 = vmatprep.subr.bf16.mxu0 %v248_v44  ;;  %v268_v56 = vpop.permute.xlu1 %267 }
  0xc9   :  { %771 = vmatpush3.bf16.msra.mxu0 %v248_v44  ;;  %v856_v47 = vpop.eup %855  ;;  %v433_v44 = vpop.permute.xlu0 %432 }
  0xcc   :  { %v278_v1 = vpop.permute.xlu1 %277 }
  0xcd   :  { %v858_v48 = vpop.eup %857 }
  0xce   :  { %v249_v42 = vpack.c.bf16 %v858_v48, %v856_v47 }
  0xd0   :  { %772 = vmatprep.subr.bf16.mxu0 %v249_v42  ;;  %v288_v7 = vpop.permute.xlu1 %287 }
  0xd1   :  { %773 = vmatpush3.bf16.msra.mxu0 %v249_v42 }
  0xd2   :  { %798 = vmatprep.subr.bf16.mxu0 %v921_v28 }
  0xd4   :  { %775 = vmatmul.mubr.msk.bf16.vlgmr.msra.gmra.mrb[0].mxu0 %vm310_vm0, %v836_v49  ;;  %v408_v30 = vpop.permute.xlu1 %407 }
  0xd5   :  { %778 = vmatprep.mubr.msk.bf16.mxu0 %vm310_vm0, %v837_v50 }
  0xd8   :  { %v418_v32 = vpop.permute.xlu1 %417 }
  0xdc   :  { %779 = vmatmul.mubr.msk.bf16.gmra.mrb[4].mxu0 %vm310_vm0, %v838_v51  ;;  %v428_v41 = vpop.permute.xlu1 %427 }
  0xdd   :  { %806 = vmatprep.mubr.msk.bf16.mxu0 %vm922_vm1, %v921_v28 }
  0xe0   :  { %v438_v49 = vpop.permute.xlu1 %437 }
 0x1a7   :  { %v776_v57 = vpop.f32.mrb[0].mxu0 }
 0x1a8   :  { %v366_v58 = vadd.f32 %v776_v57, %v263_v55  ;;  %v357_v59 = vpop.f32.mrb[1].mxu0 }
 0x1a9   :  { %v358_v61 = vadd.f32 %v357_v59, %v253_v53  ;;  %v777_v62 = vpop.f32.mrb[2].mxu0 }
 0x1aa   :  { %859 = vtanh.f32 %v366_v58  ;;  %v369_v63 = vadd.f32 %v777_v62, %v268_v56  ;;  %v360_v0 = vpop.f32.mrb[3].mxu0 }
 0x1ab   :  { %861 = vtanh.f32 %v358_v61  ;;  %v361_v2 = vadd.f32 %v360_v0, %v258_v54 }
 0x1ac   :  { %863 = vtanh.f32 %v369_v63 }
 0x1ad   :  { %865 = vtanh.f32 %v361_v2 }
 0x1af   :  { %v780_v4 = vpop.f32.mrb[4].mxu0 }
 0x1b0   :  { %v382_v5 = vadd.f32 %v780_v4, %v283_v3  ;;  %v373_v6 = vpop.f32.mrb[5].mxu0  ;;  %v84_v3 = vld [vmem:[%s1179_s7] sm:$0x1]  ;;  %v602_v4 = vand.u32 2139095040, %v1091_v46  ;;  %s929_s7 = smov [#allocation2]  }
 0x1b1   :  { %v374_v8 = vadd.f32 %v373_v6, %v273_v60  ;;  %v781_v9 = vpop.f32.mrb[6].mxu0  ;;  %s716_s24 = sshll.u32 %s929_s7, 4  ;;  %s717_s24 = int_to_ptr.vmem [resolvable:$true] %s716_s24 }
 0x1b2   :  { %867 = vtanh.f32 %v382_v5  ;;  %v385_v10 = vadd.f32 %v781_v9, %v288_v7  ;;  %v376_v11 = vpop.f32.mrb[7].mxu0  ;;  %v603_v5 = vshrl.u32 %v602_v4, 23  ;;  %s895_s8 = scalar_lea.vmem %s717_s24, 32  ;;  %p900_p1 = scmp.lt.s32.totalorder %s717_s24, %s717_s24 }
 0x1b3   :  { %869 = vtanh.f32 %v374_v8  ;;  %v377_v12 = vadd.f32 %v376_v11, %v278_v1  ;;  %v923_v11 = vmov 2102212464   ;;  %p896_p0 = scmp.ne.s32.totalorder %s717_s24, %s895_s8  ;;  %p901_p2 = scmp.lt.s32.totalorder %s895_s8, %s895_s8 }
 0x1b4   :  { %v860_v13 = vpop.eup %859  ;;  %871 = vtanh.f32 %v385_v10  ;;  %v741_v6 = vadd.s32 4294967169, %v603_v5 }
 0x1b5   :  { %v862_v14 = vpop.eup %861  ;;  %873 = vtanh.f32 %v377_v12  ;;  %p902_p3 = por %p901_p2, %p900_p1 }
 0x1b6   :  { %v864_v15 = vpop.eup %863  ;;  %v609_v7 = vadd.s32 1, %v741_v6 }
 0x1b7   :  { %v866_v16 = vpop.eup %865  ;;  %v397_v17 = vpack.c.bf16 %v864_v15, %v860_v13  ;;  %v924_v13 = vmov 920167782   ;;  %v599_v15 = vand.u32 2147483647, %v1091_v46  ;;  %p903_p4 = pnand %p902_p3, %p896_p0 }
 0x1b8   :  { %v396_v18 = vpack.c.bf16 %v866_v16, %v862_v14  ;;  %vm610_vm2 = vcmp.gt.s32.totalorder %v609_v7, 0 }
 0x1b9   :  { %v611_v8 = vsel %vm610_vm2, %v609_v7, 0  ;;  %vm600_vm10 = vcmp.le.f32.partialorder %v599_v15, 0.7853982 }
 0x1ba   :  { %782 = vmatprep.subr.bf16.mxu1 %v396_v18  ;;  %v613_v9 = vand.u32 31, %v611_v8  ;;  %v612_v16 = vshrl.u32 %v611_v8, 5 }
 0x1bb   :  { %783 = vmatpush3.bf16.msra.mxu1 %v396_v18  ;;  %v925_v18 = vmov 1326507024  }
 0x1bc   :  { %v868_v19 = vpop.eup %867  ;;  %784 = vmatprep.subr.bf16.mxu1 %v397_v17  ;;  %v614_v10 = vsub.s32 32, %v613_v9  ;;  %v625_v12 = vshll.u32 %v923_v11, %v613_v9  ;;  %vm634_vm3 = vcmp.lt.s32.totalorder %v612_v16, 4  ;;  %vm631_vm4 = vcmp.lt.s32.totalorder %v612_v16, 1 }
 0x1bd   :  { %v870_v20 = vpop.eup %869  ;;  %vm633_vm5 = vcmp.lt.s32.totalorder %v612_v16, 3  ;;  %vm632_vm6 = vcmp.lt.s32.totalorder %v612_v16, 2 }
 0x1be   :  { %v872_v21 = vpop.eup %871  ;;  %v626_v14 = vshrl.u32 %v924_v13, %v614_v10 }
 0x1bf   :  { %v874_v22 = vpop.eup %873  ;;  %785 = vmatpush3.bf16.msra.mxu1 %v397_v17  ;;  %v399_v23 = vpack.c.bf16 %v872_v21, %v868_v19  ;;  %v628_v17 = vshll.u32 %v924_v13, %v613_v9  ;;  %v629_v19 = vshrl.u32 %v925_v18, %v614_v10 }
 0x1c0   :  { %v398_v24 = vpack.c.bf16 %v874_v22, %v870_v20  ;;  %v926_v20 = vmov 683565275   ;;  %v927_v22 = vmov 2475754826  }
 0x1c1   :  { %v616_v21 = vshll.u32 %v926_v20, %v613_v9 }
 0x1c2   :  { %786 = vmatprep.subr.bf16.mxu1 %v398_v24 }
 0x1c3   :  { %787 = vmatpush3.bf16.msra.mxu1 %v398_v24  ;;  %v619_v24 = vshll.u32 %v927_v22, %v613_v9 }
 0x1c4   :  { %788 = vmatprep.subr.bf16.mxu1 %v399_v23 }
 0x1c7   :  { %789 = vmatpush3.bf16.msra.mxu1 %v399_v23  ;;  %v617_v23 = vshrl.u32 %v927_v22, %v614_v10 }
 0x1ca   :  { %791 = vmatmul.mubr.msk.bf16.vlgmr.msra.gmra.mrb[0].mxu1 %vm310_vm0, %v840_v25  ;;  %v928_v25 = vmov 2131351028  }
 0x1cb   :  { %794 = vmatprep.mubr.msk.bf16.mxu1 %vm310_vm0, %v841_v26  ;;  %v620_v26 = vshrl.u32 %v928_v25, %v614_v10 }
 0x1d2   :  { %795 = vmatmul.mubr.msk.bf16.gmra.mrb[4].mxu1 %vm310_vm0, %v842_v27  ;;  %v622_v27 = vshll.u32 %v928_v25, %v613_v9 }
 0x29d   :  { %v792_v33 = vpop.f32.mrb[0].mxu1 }
 0x29e   :  { %v515_v34 = vadd.f32 %v792_v33, %v413_v31  ;;  %v506_v35 = vpop.f32.mrb[1].mxu1  ;;  %v630_v31 = vor.u32 %v629_v19, %v628_v17  ;;  %v621_v33 = vor.u32 %v620_v26, %v619_v24 }
 0x29f   :  { %v507_v37 = vadd.f32 %v506_v35, %v403_v29  ;;  %v793_v38 = vpop.f32.mrb[2].mxu1  ;;  %v627_v29 = vor.u32 %v626_v14, %v625_v12 }
 0x2a0   :  { %875 = vtanh.f32 %v515_v34  ;;  %v518_v39 = vadd.f32 %v793_v38, %v418_v32  ;;  %v509_v40 = vpop.f32.mrb[3].mxu1  ;;  %v618_v32 = vor.u32 %v617_v23, %v616_v21 }
 0x2a1   :  { %877 = vtanh.f32 %v507_v37  ;;  %v510_v43 = vadd.f32 %v509_v40, %v408_v30  ;;  %v606_v30 = vand.u32 8388607, %v599_v15  ;;  %v640_v35 = vsel %vm634_vm3, %v627_v29, 920167782 }
 0x2a2   :  { %879 = vtanh.f32 %v518_v39  ;;  %v644_v37 = vsel %vm634_vm3, %v630_v31, 1326507024  ;;  %v639_v38 = vsel %vm631_vm4, %v618_v32, %v621_v33 }
 0x2a3   :  { %881 = vtanh.f32 %v510_v43 }
 0x2a5   :  { %v796_v47 = vpop.f32.mrb[4].mxu1 }
 0x2a6   :  { %v531_v48 = vadd.f32 %v796_v47, %v433_v44  ;;  %v522_v42 = vpop.f32.mrb[5].mxu1 }
 0x2a7   :  { %v523_v50 = vadd.f32 %v522_v42, %v423_v36  ;;  %v797_v51 = vpop.f32.mrb[6].mxu1  ;;  %v607_v36 = vor.u32 8388608, %v606_v30 }
 0x2a8   :  { %883 = vtanh.f32 %v531_v48  ;;  %v534_v52 = vadd.f32 %v797_v51, %v438_v49  ;;  %v525_v53 = vpop.f32.mrb[7].mxu1  ;;  %v615_v49 = vshrl.u32 %v926_v20, %v614_v10 }
 0x2a9   :  { %885 = vtanh.f32 %v523_v50  ;;  %v526_v54 = vadd.f32 %v525_v53, %v428_v41  ;;  %v645_v41 = vsel %vm633_vm5, %v627_v29, %v644_v37  ;;  %v647_v43 = vshll.u32 %v607_v36, 8 }
 0x2aa   :  { %v876_v55 = vpop.eup %875  ;;  %887 = vtanh.f32 %v534_v52  ;;  %v635_v53 = vsel %vm631_vm4, %v615_v49, %v618_v32  ;;  %v598_v32 = vmul.f32 -0.0, %v1086_v45 }
 0x2ab   :  { %v878_v56 = vpop.eup %877  ;;  %889 = vtanh.f32 %v526_v54 }
 0x2ac   :  { %v880_v57 = vpop.eup %879 }
 0x2ad   :  { %v882_v58 = vpop.eup %881  ;;  %v546_v59 = vpack.c.bf16 %v880_v57, %v876_v55 }
 0x2ae   :  { %v545_v60 = vpack.c.bf16 %v882_v58, %v878_v56 }
 0x2b0   :  { %799 = vmatpush3.bf16.msra.mxu0 %v545_v60 }
 0x2b1   :  { %800 = vmatprep.subr.bf16.mxu0 %v921_v28 }
 0x2b2   :  { %v884_v61 = vpop.eup %883 }
 0x2b3   :  { %v886_v62 = vpop.eup %885 }
 0x2b4   :  { %v888_v63 = vpop.eup %887  ;;  %801 = vmatpush3.bf16.msra.mxu0 %v546_v59 }
 0x2b5   :  { %v890_v0 = vpop.eup %889  ;;  %802 = vmatprep.subr.bf16.mxu0 %v921_v28  ;;  %v548_v1 = vpack.c.bf16 %v888_v63, %v884_v61 }
 0x2b6   :  { %v547_v2 = vpack.c.bf16 %v890_v0, %v886_v62 }
 0x2b8   :  { %803 = vmatpush3.bf16.msra.mxu0 %v547_v2 }
 0x2b9   :  { %804 = vmatprep.subr.bf16.mxu0 %v921_v28  ;;  %v623_v28 = vshrl.u32 %v923_v11, %v614_v10 }
 0x2bb   :  { %v624_v34 = vor.u32 %v623_v28, %v622_v27 }
 0x2bc   :  { %805 = vmatpush3.bf16.msra.mxu0 %v548_v1 }
 0x2bd   :  { %v641_v39 = vsel %vm633_vm5, %v624_v34, %v640_v35  ;;  %v643_v40 = vsel %vm631_vm4, %v621_v33, %v624_v34  ;;  %v636_v52 = vsel %vm634_vm3, %v624_v34, 2102212464  ;;  %v552_v34 = vpop.permute.xlu0 %551 }
 0x2be   :  { %v642_v44 = vsel %vm632_vm6, %v639_v38, %v641_v39  ;;  %v646_v47 = vsel %vm632_vm6, %v643_v40, %v645_v41  ;;  %v637_v54 = vsel %vm633_vm5, %v621_v33, %v636_v52 }
 0x2bf   :  { %807 = vmatmul.mubr.msk.bf16.vlgmr.msra.gmra.mrb[8].mxu0 %vm310_vm0, %v84_v3  ;;  %v1139_v48 = vmul.u32.u64.low %v647_v43, %v642_v44  ;;  %v1140_v42 = vmul.u32.u64.high %v647_v43, %v642_v44, %v1139_v48  ;;  %v1142_v50 = vmul.u32.u64.low %v647_v43, %v646_v47  ;;  %v1143_v51 = vmul.u32.u64.high %v647_v43, %v646_v47, %v1142_v50 }
 0x2c0   :  { %v638_v55 = vsel %vm632_vm6, %v635_v53, %v637_v54 }
 0x2c1   :  { %v657_v56 = vadd.s32 1, %v1140_v42  ;;  %vm656_vm7 = vc.u32 %v1143_v51, %v1139_v48  ;;  %v654_v57 = vmul.u32 %v647_v43, %v638_v55  ;;  %v655_v6 = vadd.s32 %v1139_v48, %v1143_v51 }
 0x2c3   :  { %v658_v58 = vsel %vm656_vm7, %v657_v56, %v1140_v42 }
 0x2c4   :  { %v659_v59 = vadd.s32 %v658_v58, %v654_v57 }
 0x2c6   :  { %v660_v60 = vadd.s32 536870912, %v659_v59 }
 0x2c8   :  { %v661_v61 = vshrl.u32 %v660_v60, 30 }
 0x2ca   :  { %v662_v62 = vshll.u32 %v661_v61, 30  ;;  %v685_v20 = vsub.s32 4, %v661_v61 }
 0x2cc   :  { %v663_v63 = vsub.s32 %v659_v59, %v662_v62  ;;  %v686_v22 = vsel %vm601_vm9, %v685_v20, %v661_v61 }
 0x2cd   :  { %v688_v23 = vsel %vm600_vm10, 0, %v686_v22 }
 0x2ce   :  { %v665_v0 = vsub.s32 0, %v663_v63  ;;  %v692_v24 = vadd.s32 3, %v688_v23 }
 0x2d0   :  { %v742_v1 = vmin.u32 %v665_v0, %v663_v63  ;;  %v693_v27 = vand.u32 3, %v692_v24 }
 0x2d2   :  { %v667_v2 = vclz %v742_v1  ;;  %vm695_vm11 = vcmp.eq.s32.totalorder %v693_v27, 0  ;;  %vm698_vm12 = vcmp.eq.s32.totalorder %v693_v27, 2  ;;  %vm694_vm13 = vcmp.lt.s32.totalorder %v693_v27, 2 }
 0x2d4   :  { %v743_v3 = vadd.s32 4294967294, %v667_v2 }
 0x2d6   :  { %vm744_vm8 = vcmp.lt.s32.totalorder %v743_v3, 0 }
 0x2d7   :  { %v670_v4 = vsel %vm744_vm8, 0, %v743_v3 }
 0x2d8   :  { %v675_v5 = vsub.s32 4294967266, %v670_v4  ;;  %v671_v7 = vsub.s32 32, %v670_v4  ;;  %v672_v9 = vshll.u32 %v663_v63, %v670_v4 }
 0x2da   :  { %v676_v8 = vadd.s32 127, %v675_v5  ;;  %v673_v10 = vshrl.u32 %v655_v6, %v671_v7 }
 0x2dc   :  { %v677_v11 = vshll.u32 %v676_v8, 23  ;;  %v674_v12 = vor.u32 %v673_v10, %v672_v9 }
 0x2de   :  { %v678_v13 = vor.u32 4788187, %v677_v11  ;;  %v681_v16 = vcvt.s32.f32 %v674_v12 }
 0x2e0   :  { %v679_v14 = vand.u32 2147483647, %v678_v13 }
 0x2e2   :  { %v682_v17 = vmul.f32 %v681_v16, %v679_v14 }
 0x2e4   :  { %v683_v18 = vxor.u32 2147483648, %v682_v17 }
 0x2e6   :  { %v684_v19 = vsel %vm601_vm9, %v683_v18, %v682_v17 }
 0x2e7   :  { %v687_v21 = vsel %vm600_vm10, %v1091_v46, %v684_v19 }
 0x2e8   :  { %891 = vcosq.f32 %v687_v21 }
 0x2e9   :  { %893 = vsinq.f32 %v687_v21 }
 0x2f2   :  { %v892_v25 = vpop.eup %891 }
 0x2f3   :  { %v894_v26 = vpop.eup %893  ;;  %v699_v29 = vxor.u32 2147483648, %v892_v25 }
 0x2f4   :  { %v696_v28 = vxor.u32 2147483648, %v894_v26 }
 0x2f5   :  { %v700_v31 = vsel %vm698_vm12, %v699_v29, %v894_v26 }
 0x2f6   :  { %v697_v30 = vsel %vm695_vm11, %v892_v25, %v696_v28 }
 0x2f7   :  { %v701_v15 = vsel %vm694_vm13, %v697_v30, %v700_v31 }
 0x2f8   :  { %v702_v33 = vsel %vm691_vm14, nan, %v701_v15 }
 0x2f9   :  { %v703_v38 = vsub.f32 %v598_v32, %v702_v33 }
 0x392   :  { %v591_v35 = vpop.f32.mrb[8].mxu0 }
 0x393   :  { %v592_v36 = vadd.f32 %v591_v35, %v552_v34  ;;  %v808_v37 = vpop.f32.mrb[9].mxu0 }
 0x394   :  { %v594_v39 = vpop.f32.mrb[10].mxu0 }
 0x395   :  { %v597_v40 = vadd.f32 %v592_v36, %v1086_v45  ;;  %v705_v41 = vrot.slane %v592_v36, 1  ;;  %v809_v43 = vpop.f32.mrb[11].mxu0 }
 0x397   :  { %708 = vst [vmem:[#allocation2] sm:$0x1] %v597_v40  ;;  %v707_v44 = vadd.f32 %v705_v41, %v703_v38 }
 0x399   :  { %709 = vst [vmem:[#allocation2 + $0x1] sm:$0x1] %v707_v44 }
 0x39a   :  { %906 = shalt.err (!%p903_p4)
}
 0x39b   :  { %s907_s26 = scalar_lea.hbm %s1181_s9, 32 }
 0x39c   :  { %p908_p5 = scmp.ne.s32.totalorder %s1181_s9, %s907_s26  ;;  %p911_p6 = scmp.lt.u32.totalorder %s907_s26, %s1181_s9 }
 0x39e   :  { %p913_p7 = pnand %p911_p6, %p908_p5 }
 0x3a0   :  { %916 = shalt.err (!%p913_p7)
}
 0x3a1   :  { %719 = dma.vmem_to_hbm [thread:$0]  %s717_s24, 32, %s1181_s9, [#allocation3]  }
 0x3a2   :  { %917 = dma.done.wait [#allocation3], 32  }
 0x3a3   :  { %918 = vsyncadd [#allocation3], 4294967264 }
 0x3a4   :  { %723 = vsyncpa [#allocation3], 1 }

</bundles_post_ra>
